<compile_context>
chip_gen: v6e
topology: v6e:2x2x1
jax: 0.10.0
libtpu: 0.0.40
codegen_flags: <defaults>
</compile_context>

<pallas_src>
import jax
import jax.numpy as jnp
from jax.experimental import pallas as pl
from jax.experimental.pallas import tpu as pltpu


def dqn_kernel(x_ref, w1_ref, b1_ref, w2_ref, b2_ref, o_ref):
    # fc1: (TB, in) @ (in, hidden) + (1, hidden) -> relu
    h = jnp.dot(x_ref[...], w1_ref[...], preferred_element_type=jnp.float32)
    h = jnp.maximum(h + b1_ref[...], 0.0)
    # out: (TB, hidden) @ (hidden, out_actions) + (1, out_actions)
    y = jnp.dot(h, w2_ref[...], preferred_element_type=jnp.float32)
    o_ref[...] = (y + b2_ref[...]).astype(o_ref.dtype)


def _round_up(x, m):
    return ((x + m - 1) // m) * m


def _num_tensorcores():
    # Best-effort detection (v7x has 2 TCs/chip).  Falls back to 1.
    try:
        d = jax.devices()[0]
        return max(1, int(getattr(d, "num_cores", 1)))
    except Exception:
        return 1


def dqn_forward(x, w1, b1, w2, b2, *, block_b=8192, num_tensorcores=None):
    """x: (B, in_states) f32; w1: (in, hidden); b1: (1, hidden);
    w2: (hidden, out_actions); b2: (1, out_actions)."""
    B, in_states = x.shape
    hidden, out_actions = w2.shape

    if num_tensorcores is None:
        num_tensorcores = _num_tensorcores()

    # Batch tile: multiple of 8 sublanes, as large as possible (step-overhead
    # amortization), capped at block_b.  On multi-TC chips (v7x) make sure the
    # "parallel" batch axis has at least num_tensorcores grid steps so the
    # second core is not idle on mid-size batches; on single-TC chips keep the
    # single big tile to avoid extra step overhead.
    tb = min(block_b, _round_up(B, 8))
    if num_tensorcores >= 2 and B > 8:
        tb = min(tb, _round_up(pl.cdiv(B, num_tensorcores), 8))
    tb = max(tb, 8)

    grid = (pl.cdiv(B, tb),)

    flops = 2 * B * (in_states * hidden + hidden * out_actions)
    bytes_accessed = 4 * (
        x.size + w1.size + b1.size + w2.size + b2.size + B * out_actions
    )

    out = pl.pallas_call(
        dqn_kernel,
        out_shape=jax.ShapeDtypeStruct((B, out_actions), jnp.float32),
        grid=grid,
        in_specs=[
            pl.BlockSpec((tb, in_states), lambda i: (i, 0)),        # x tile
            pl.BlockSpec((in_states, hidden), lambda i: (0, 0)),    # w1 resident
            pl.BlockSpec((1, hidden), lambda i: (0, 0)),            # b1 resident
            pl.BlockSpec((hidden, out_actions), lambda i: (0, 0)),  # w2 resident
            pl.BlockSpec((1, out_actions), lambda i: (0, 0)),       # b2 resident
        ],
        out_specs=pl.BlockSpec((tb, out_actions), lambda i: (i, 0)),
        compiler_params=pltpu.CompilerParams(
            dimension_semantics=("parallel",),
        ),
        cost_estimate=pl.CostEstimate(
            flops=flops, transcendentals=0, bytes_accessed=bytes_accessed
        ),
    )(x, w1, b1, w2, b2)

    return out


def init_params(key, in_states, hidden, out_actions):
    # Mimic PyTorch nn.Linear default init: U(-1/sqrt(fan_in), 1/sqrt(fan_in)).
    k1, k2, k3, k4 = jax.random.split(key, 4)
    bnd1 = 1.0 / jnp.sqrt(in_states)
    bnd2 = 1.0 / jnp.sqrt(hidden)
    w1 = jax.random.uniform(k1, (in_states, hidden), jnp.float32, -bnd1, bnd1)
    b1 = jax.random.uniform(k2, (1, hidden), jnp.float32, -bnd1, bnd1)
    w2 = jax.random.uniform(k3, (hidden, out_actions), jnp.float32, -bnd2, bnd2)
    b2 = jax.random.uniform(k4, (1, out_actions), jnp.float32, -bnd2, bnd2)
    return w1, b1, w2, b2


def reference_forward(x, w1, b1, w2, b2):
    h = jnp.maximum(x @ w1 + b1, 0.0)
    return h @ w2 + b2


if __name__ == "__main__":
    # FrozenLake 4x4: in_states=16 (one-hot state), out_actions=4, hidden=16.
    in_states, hidden, out_actions = 16, 16, 4
    batch = 2

    key = jax.random.PRNGKey(0)
    kx, kp = jax.random.split(key)
    x = jax.random.normal(kx, (batch, in_states), jnp.float32)
    w1, b1, w2, b2 = init_params(kp, in_states, hidden, out_actions)

    y = dqn_forward(x, w1, b1, w2, b2)
    y = jax.block_until_ready(y)

    y_ref = reference_forward(x, w1, b1, w2, b2)
    assert y.shape == (batch, out_actions)
    assert jnp.allclose(y, y_ref, atol=1e-5, rtol=1e-5)

    # Larger, non-multiple-of-tile batch exercises the cdiv grid / masked
    # edge-block path (and the multi-step grid on v7x).
    xb = jax.random.normal(kx, (1000, in_states), jnp.float32)
    yb = jax.block_until_ready(dqn_forward(xb, w1, b1, w2, b2))
    assert yb.shape == (1000, out_actions)
    assert jnp.allclose(yb, reference_forward(xb, w1, b1, w2, b2),
                        atol=1e-5, rtol=1e-5)

    # Also force a small tile so multiple full + one partial block run.
    yc = jax.block_until_ready(
        dqn_forward(xb, w1, b1, w2, b2, block_b=256, num_tensorcores=1))
    assert jnp.allclose(yc, reference_forward(xb, w1, b1, w2, b2),
                        atol=1e-5, rtol=1e-5)

    print("KERNEL_OK")
</pallas_src>

<mosaic_0001>
module attributes {stable_mosaic.version = 11 : i64} {
  func.func @dqn_kernel(%arg0: i32, %arg1: memref<8x16xf32, #tpu.memory_space<vmem>>, %arg2: memref<16x16xf32, #tpu.memory_space<vmem>>, %arg3: memref<1x16xf32, #tpu.memory_space<vmem>>, %arg4: memref<16x4xf32, #tpu.memory_space<vmem>>, %arg5: memref<1x4xf32, #tpu.memory_space<vmem>>, %arg6: memref<8x4xf32, #tpu.memory_space<vmem>>) attributes {dimension_semantics = [#tpu.dimension_semantics<parallel>], iteration_bounds = array<i64: 1>, scalar_prefetch = 0 : i64, scratch_operands = 0 : i64, tpu.core_type = #tpu.core_type<tc>, window_params = [{transform_indices = @transform_0, window_bounds = array<i64: 8, 16>}, {pipeline_mode = #tpu.pipeline_mode<synchronous>, transform_indices = @transform_1, window_bounds = array<i64: 16, 16>}, {pipeline_mode = #tpu.pipeline_mode<synchronous>, transform_indices = @transform_2, window_bounds = array<i64: 1, 16>}, {pipeline_mode = #tpu.pipeline_mode<synchronous>, transform_indices = @transform_3, window_bounds = array<i64: 16, 4>}, {pipeline_mode = #tpu.pipeline_mode<synchronous>, transform_indices = @transform_4, window_bounds = array<i64: 1, 4>}, {transform_indices = @transform_5, window_bounds = array<i64: 8, 4>}]} {
    %c0 = arith.constant 0 : index
    %c0_0 = arith.constant 0 : index
    %0 = vector.load %arg1[%c0, %c0_0] : memref<8x16xf32, #tpu.memory_space<vmem>>, vector<8x16xf32>
    %c0_1 = arith.constant 0 : index
    %c0_2 = arith.constant 0 : index
    %1 = vector.load %arg2[%c0_1, %c0_2] : memref<16x16xf32, #tpu.memory_space<vmem>>, vector<16x16xf32>
    %cst = arith.constant dense<0.000000e+00> : vector<8x16xf32>
    %2 = tpu.matmul %0, %1, %cst {dimension_numbers = #tpu.dot_dimension_numbers<[1], [0], [0], [1], [0, 0, 1, 1], [], []>} : vector<8x16xf32>, vector<16x16xf32>, vector<8x16xf32> -> vector<8x16xf32>
    %c0_3 = arith.constant 0 : index
    %c0_4 = arith.constant 0 : index
    %3 = vector.load %arg3[%c0_3, %c0_4] : memref<1x16xf32, #tpu.memory_space<vmem>>, vector<1x16xf32>
    %4 = vector.broadcast %3 : vector<1x16xf32> to vector<8x16xf32>
    %5 = arith.addf %2, %4 : vector<8x16xf32>
    %cst_5 = arith.constant 0.000000e+00 : f32
    %6 = vector.broadcast %cst_5 : f32 to vector<8x16xf32>
    %7 = arith.maximumf %5, %6 : vector<8x16xf32>
    %c0_6 = arith.constant 0 : index
    %c0_7 = arith.constant 0 : index
    %8 = vector.load %arg4[%c0_6, %c0_7] : memref<16x4xf32, #tpu.memory_space<vmem>>, vector<16x4xf32>
    %cst_8 = arith.constant dense<0.000000e+00> : vector<8x4xf32>
    %9 = tpu.matmul %7, %8, %cst_8 {dimension_numbers = #tpu.dot_dimension_numbers<[1], [0], [0], [1], [0, 0, 1, 1], [], []>} : vector<8x16xf32>, vector<16x4xf32>, vector<8x4xf32> -> vector<8x4xf32>
    %c0_9 = arith.constant 0 : index
    %c0_10 = arith.constant 0 : index
    %10 = vector.load %arg5[%c0_9, %c0_10] : memref<1x4xf32, #tpu.memory_space<vmem>>, vector<1x4xf32>
    %11 = vector.broadcast %10 : vector<1x4xf32> to vector<8x4xf32>
    %12 = arith.addf %9, %11 : vector<8x4xf32>
    %c0_11 = arith.constant 0 : index
    %c0_12 = arith.constant 0 : index
    %13 = vector.load %arg6[%c0_11, %c0_12] : memref<8x4xf32, #tpu.memory_space<vmem>>, vector<8x4xf32>
    tpu.vector_store %arg6[%c0_11, %c0_12], %12 {strides = array<i32>} : memref<8x4xf32, #tpu.memory_space<vmem>>, vector<8x4xf32>,
    return
  }
  func.func @transform_0(%arg0: i32) -> (i32, i32) {
    %c0_i32 = arith.constant 0 : i32
    %c0_i32_0 = arith.constant 0 : i32
    return %arg0, %c0_i32 : i32, i32
  }
  func.func @transform_1(%arg0: i32) -> (i32, i32) {
    %c0_i32 = arith.constant 0 : i32
    %c0_i32_0 = arith.constant 0 : i32
    %c0_i32_1 = arith.constant 0 : i32
    return %c0_i32, %c0_i32_0 : i32, i32
  }
  func.func @transform_2(%arg0: i32) -> (i32, i32) {
    %c0_i32 = arith.constant 0 : i32
    %c0_i32_0 = arith.constant 0 : i32
    %c0_i32_1 = arith.constant 0 : i32
    return %c0_i32, %c0_i32_0 : i32, i32
  }
  func.func @transform_3(%arg0: i32) -> (i32, i32) {
    %c0_i32 = arith.constant 0 : i32
    %c0_i32_0 = arith.constant 0 : i32
    %c0_i32_1 = arith.constant 0 : i32
    return %c0_i32, %c0_i32_0 : i32, i32
  }
  func.func @transform_4(%arg0: i32) -> (i32, i32) {
    %c0_i32 = arith.constant 0 : i32
    %c0_i32_0 = arith.constant 0 : i32
    %c0_i32_1 = arith.constant 0 : i32
    return %c0_i32, %c0_i32_0 : i32, i32
  }
  func.func @transform_5(%arg0: i32) -> (i32, i32) {
    %c0_i32 = arith.constant 0 : i32
    %c0_i32_0 = arith.constant 0 : i32
    return %arg0, %c0_i32 : i32, i32
  }
}

</mosaic_0001>

<bundles_post_ra>
// kernel: tpu_custom_call.1
= control target key start
LH: loop header
LB: loop body
LE: loop exit
PB: predicated region body
PF: predicated region fallthrough
CT: control target
= control target key end

     0   :  { %10 = vsyncpa [#allocation3], 0  ;;  %v257_v1 = vmov 0.0   ;;  %vm258_vm0 = vmmov 0   ;;  %vm31_vm1 = vcmask 130048   ;;  %vm188_vm2 = vcmask 31744   ;;  %s318_s0 = inlined_call_operand.vmem [shape: f32[2,16], index: 0, kind: input, shape index: {}]   ;;  %s319_s1 = inlined_call_operand.vmem [shape: f32[16,16], index: 1, kind: input, shape index: {}]   ;;  %s320_s2 = inlined_call_operand.vmem [shape: f32[1,16], index: 2, kind: input, shape index: {}]   ;;  %s321_s3 = inlined_call_operand.vmem [shape: f32[16,4], index: 3, kind: input, shape index: {}]   ;;  %s322_s4 = inlined_call_operand.vmem [shape: f32[1,4], index: 4, kind: input, shape index: {}]   ;;  %s323_s5 = inlined_call_operand.hbm [shape: f32[2,4], index: 5, kind: output, shape index: {}]  }
   0x1   :  { %v23_v0 = vld [vmem:[%s319_s1 + $0x8] sm:$0xff]  ;;  %216 = vmatprep.subr.mxu0 %v257_v1  ;;  %v22_v2 = vld [vmem:[%s319_s1] sm:$0xff]  ;;  %220 = vmatprep.mubr.msk.f32.mxu0 %vm258_vm0, %v257_v1 }
   0x2   :  { %217 = vmatpush3.msra.mxu0 %v23_v0  ;;  %v21_v3 = vld [vmem:[%s318_s0] sm:$0xff]  ;;  %223 = vmatprep.subr.mxu1 %v257_v1  ;;  %v107_v4 = vld [vmem:[%s321_s3 + $0x8] sm:$0xff] }
   0x3   :  { %218 = vmatprep.subr.mxu0 %v257_v1  ;;  %227 = vmatprep.mubr.msk.f32.mxu1 %vm258_vm0, %v257_v1  ;;  %v106_v5 = vld [vmem:[%s321_s3] sm:$0xff] }
   0x4   :  { %219 = vmatpush3.msra.mxu0 %v22_v2  ;;  %224 = vmatpush3.msra.mxu1 %v107_v4  ;;  %v206_v6 = vld [vmem:[%s320_s2] ss:$0 sm:$0xff] }
   0x5   :  { %221 = vmatmul.mubr.msk.f32.vlgmr.msra.gmra.mxu0 %vm31_vm1, %v21_v3  ;;  %225 = vmatprep.subr.mxu1 %v257_v1  ;;  %v208_v11 = vld [vmem:[%s322_s4] ss:$0 sm:$0xff] }
   0x6   :  { %226 = vmatpush3.msra.mxu1 %v106_v5 }
  0xc5   :  { %v101_v7 = vpop.f32.mrf.mxu0 }
  0xc6   :  { %v102_v8 = vadd.f32 %v206_v6, %v101_v7 }
  0xc7   :  { %v222_v9 = vpop.f32.mrf.mxu0 }
  0xc8   :  { %v105_v10 = vmax.f32 %v102_v8, 0.0 }
  0xca   :  { %228 = vmatmul.mubr.msk.f32.vlgmr.msra.gmra.mxu1 %vm31_vm1, %v105_v10 }
 0x18a   :  { %v184_v12 = vpop.f32.mrf.mxu1 }
 0x18b   :  { %v185_v13 = vadd.f32 %v208_v11, %v184_v12 }
 0x18c   :  { %v229_v14 = vpop.f32.mrf.mxu1 }
 0x18d   :  { %189 = vst.msk [vmem:[#allocation2] sm:$0xff] %vm188_vm2, %v185_v13 }
 0x18e   :  { %194 = vsyncadd [#allocation3], 96  ;;  %s259_s3 = smov [#allocation2]  }
 0x18f   :  { %s195_s30 = sshll.u32 %s259_s3, 4  ;;  %s196_s30 = int_to_ptr.vmem [resolvable:$true] %s195_s30 }
 0x190   :  { %s235_s2 = scalar_lea.vmem %s196_s30, 32  ;;  %s239_s6 = scalar_lea.vmem %s196_s30, 128 }
 0x191   :  { %p236_p0 = scmp.ne.s32.totalorder %s196_s30, %s235_s2  ;;  %p240_p1 = scmp.lt.s32.totalorder %s196_s30, %s196_s30 }
 0x192   :  { %p241_p2 = scmp.lt.s32.totalorder %s239_s6, %s235_s2 }
 0x194   :  { %p242_p3 = por %p241_p2, %p240_p1 }
 0x196   :  { %p243_p4 = pnand %p242_p3, %p236_p0 }
 0x198   :  { %246 = shalt.err (!%p243_p4)
}
 0x199   :  { %s260_s7 = smov 32   ;;  %s261_s8 = smov 2  }
 0x19a   :  { %201 = dma.vmem_to_hbm [thread:$0]  %s196_s30, 32, %s323_s5, [#allocation3], %s260_s7, %s260_s7, %s261_s8  }
 0x19b   :  { %255 = dma.done.wait [#allocation3], 128  }
 0x19c   :  { %256 = vsyncadd [#allocation3], 4294967168 }
 0x19d   :  { %205 = vsyncpa [#allocation3], 1 }

</bundles_post_ra>
